<compile_context>
chip_gen: v5e
topology: v5e:2x2
jax: 0.10.0
libtpu: 0.0.40
codegen_flags: <defaults>
</compile_context>

<pallas_src>
import functools

import jax
import jax.numpy as jnp
from jax import lax
from jax.experimental import pallas as pl
from jax.experimental.pallas import tpu as pltpu


def _round_up(x, m):
    return ((x + m - 1) // m) * m


def _lane0(value):
    """Place a scalar into lane 0 of a lane-dense (1, 128) output row."""
    lane = lax.broadcasted_iota(jnp.int32, (1, 128), 1)
    return jnp.where(lane == 0, value, jnp.float32(0.0))


def _row_valid_mask(tile_rows, batch):
    """(TB, 1) f32 mask: 1.0 for rows that exist in the original batch."""
    pid = pl.program_id(0)
    row = lax.broadcasted_iota(jnp.int32, (tile_rows, 1), 0)
    return ((pid * tile_rows + row) < batch).astype(jnp.float32)


def _cross_entropy_rows(logits, labels):
    """Per-row CE contribution lse - logits[row, label], shape (TB, 1)."""
    TB, C = logits.shape
    col = lax.broadcasted_iota(jnp.int32, (TB, C), 1)
    m = jnp.max(logits, axis=1, keepdims=True)
    lse = m + jnp.log(jnp.sum(jnp.exp(logits - m), axis=1, keepdims=True))
    picked = jnp.sum(jnp.where(col == labels, logits, 0.0), axis=1,
                     keepdims=True)
    return lse - picked


def _base_ce_kernel(out_ref, labels_ref, loss_ref, *, batch, tile_rows):
    """Cross-entropy (mean over original batch) -> per-tile partial."""
    row_valid = _row_valid_mask(tile_rows, batch)
    ce = _cross_entropy_rows(out_ref[...], labels_ref[...])
    part = jnp.sum(ce * row_valid) * (1.0 / float(batch))
    loss_ref[...] = _lane0(part)


def _distill_kernel(x_ref, w_ref, b_ref, out_ref, kd_ref, labels_ref, loss_ref,
                    *, distillation_type, alpha, tau, batch, classes,
                    tile_rows):
    outputs = out_ref[...]                            # (TB, C) f32
    outputs_kd = kd_ref[...]                          # (TB, C) f32
    labels = labels_ref[...]                          # (TB, 1) int32
    TB, C = outputs.shape

    row_valid = _row_valid_mask(tile_rows, batch)
    inv_B = 1.0 / float(batch)

    # ---- base criterion: cross-entropy (normalized by original B) -----------
    base_part = jnp.sum(_cross_entropy_rows(outputs, labels) * row_valid)

    # ---- teacher forward (no_grad): bf16 MXU matmul, f32 accumulate ---------
    # For the soft path, 1/tau is already folded into w_ref / b_ref.
    teacher = jnp.dot(x_ref[...], w_ref[...],
                      preferred_element_type=jnp.float32) + b_ref[...]

    if distillation_type == "soft":
        zs = outputs_kd * (1.0 / float(tau))
        zt = teacher                                  # == teacher_logits / tau
        m_s = jnp.max(zs, axis=1, keepdims=True)
        m_t = jnp.max(zt, axis=1, keepdims=True)
        e_t = jnp.exp(zt - m_t)
        denom_s = jnp.sum(jnp.exp(zs - m_s), axis=1, keepdims=True)
        denom_t = jnp.sum(e_t, axis=1, keepdims=True)
        # log_softmax(teacher/T) - log_softmax(kd/T), without re-exponentiating
        t_minus_s = ((zt - zs) - (m_t - m_s)
                     - (jnp.log(denom_t) - jnp.log(denom_s)))
        # F.kl_div(s, t, reduction='sum', log_target=True) = sum exp(t)*(t - s)
        kl_rows = (jnp.sum(e_t * t_minus_s, axis=1, keepdims=True)
                   * pl.reciprocal(denom_t, approx=True))
        distill_part = jnp.sum(kl_rows * row_valid)
        scale = float(tau) * float(tau) / float(batch * classes)
    else:  # "hard"
        # argmax over classes (first-index tie-break for exact ties).
        col = lax.broadcasted_iota(jnp.int32, (TB, C), 1)
        t_max = jnp.max(teacher, axis=1, keepdims=True)
        arg = jnp.min(jnp.where(teacher == t_max, col, C), axis=1,
                      keepdims=True)
        distill_part = jnp.sum(_cross_entropy_rows(outputs_kd, arg) * row_valid)
        scale = inv_B

    a = float(alpha)
    tile_loss = (1.0 - a) * inv_B * base_part + a * scale * distill_part
    loss_ref[...] = _lane0(tile_loss)


def logit_distillation_loss(inputs, teacher_w, teacher_b, outputs, outputs_kd,
                            labels, *, distillation_type="soft", alpha=0.5,
                            tau=2.0):
    assert distillation_type in ("none", "soft", "hard")
    B, C = outputs.shape
    D = inputs.shape[1]

    # Batch tile: <=128 rows (v5e scoped-VMEM safe), 16-row aligned (bf16
    # sublane packing), and ~B/2 so v7x's two TensorCores both get work.
    TB = min(128, _round_up(max((B + 1) // 2, 1), 16))
    Bp = _round_up(B, TB)
    n_tiles = Bp // TB

    def pad_rows(a, rows):
        return jnp.pad(a, ((0, rows - a.shape[0]), (0, 0)))

    outputs_p = pad_rows(outputs.astype(jnp.float32), Bp)
    labels_p = pad_rows(labels.astype(jnp.int32).reshape(B, 1), Bp)

    cparams = pltpu.CompilerParams(dimension_semantics=("parallel",))

    if distillation_type == "none":
        # CE-only kernel: no DMA of inputs / teacher W,b / outputs_kd.
        kernel = functools.partial(_base_ce_kernel, batch=B, tile_rows=TB)
        cost = pl.CostEstimate(
            flops=4 * Bp * C,
            transcendentals=Bp * C,
            bytes_accessed=(Bp * C + Bp + n_tiles * 128) * 4)
        partials = pl.pallas_call(
            kernel,
            out_shape=jax.ShapeDtypeStruct((n_tiles, 128), jnp.float32),
            grid=(n_tiles,),
            in_specs=[
                pl.BlockSpec((TB, C), lambda i: (i, 0)),    # class-token logits
                pl.BlockSpec((TB, 1), lambda i: (i, 0)),    # labels
            ],
            out_specs=pl.BlockSpec((1, 128), lambda i: (i, 0)),
            compiler_params=cparams,
            cost_estimate=cost,
        )(outputs_p, labels_p)
        return jnp.sum(partials)

    Dp = _round_up(D, 128)                 # MXU-friendly contraction dim
    inv_T = 1.0 / float(tau) if distillation_type == "soft" else 1.0

    # bf16 operands for the (no_grad) teacher matmul; 1/tau folded into W, b.
    inputs_p = jnp.pad(inputs.astype(jnp.float32),
                       ((0, Bp - B), (0, Dp - D))).astype(jnp.bfloat16)
    w_p = (jnp.pad(teacher_w.astype(jnp.float32), ((0, Dp - D), (0, 0)))
           * inv_T).astype(jnp.bfloat16)
    b_p = teacher_b.astype(jnp.float32).reshape(1, C) * inv_T
    outputs_kd_p = pad_rows(outputs_kd.astype(jnp.float32), Bp)

    kernel = functools.partial(
        _distill_kernel,
        distillation_type=distillation_type, alpha=alpha, tau=tau,
        batch=B, classes=C, tile_rows=TB)

    cost = pl.CostEstimate(
        flops=2 * Bp * Dp * C,
        transcendentals=3 * Bp * C,
        bytes_accessed=(Bp * Dp * 2 + Dp * C * 2 + C * 4
                        + 2 * Bp * C * 4 + Bp * 4 + n_tiles * 128 * 4))

    def run(resident_mode):
        in_specs = [
            pl.BlockSpec((TB, Dp), lambda i: (i, 0)),       # inputs tile (bf16)
            pl.BlockSpec((Dp, C), lambda i: (0, 0),         # teacher W (resident)
                         pipeline_mode=resident_mode),
            pl.BlockSpec((1, C), lambda i: (0, 0),          # teacher b (resident)
                         pipeline_mode=resident_mode),
            pl.BlockSpec((TB, C), lambda i: (i, 0)),        # class-token logits
            pl.BlockSpec((TB, C), lambda i: (i, 0)),        # dist-token logits
            pl.BlockSpec((TB, 1), lambda i: (i, 0)),        # labels
        ]
        return pl.pallas_call(
            kernel,
            out_shape=jax.ShapeDtypeStruct((n_tiles, 128), jnp.float32),
            grid=(n_tiles,),
            in_specs=in_specs,
            out_specs=pl.BlockSpec((1, 128), lambda i: (i, 0)),
            compiler_params=cparams,
            cost_estimate=cost,
        )(inputs_p, w_p, b_p, outputs_p, outputs_kd_p, labels_p)

    try:
        # Resident (constant index_map) operands do not need double-buffering.
        partials = run(pl.Buffered(1))
    except Exception:
        # Fallback: default buffering if single-buffered specs are rejected.
        partials = run(None)
    return jnp.sum(partials)


if __name__ == "__main__":
    B, D, C = 8, 32, 16
    key = jax.random.PRNGKey(0)
    k_in, k_out, k_kd, k_lbl, k_w, k_b = jax.random.split(key, 6)

    inputs = jax.random.normal(k_in, (B, D), dtype=jnp.float32)
    outputs = jax.random.normal(k_out, (B, C), dtype=jnp.float32)     # class token
    outputs_kd = jax.random.normal(k_kd, (B, C), dtype=jnp.float32)   # dist token
    labels = jax.random.randint(k_lbl, (B,), 0, C, dtype=jnp.int32)

    # deterministic synthetic teacher (linear classifier)
    teacher_w = 0.1 * jax.random.normal(k_w, (D, C), dtype=jnp.float32)
    teacher_b = 0.01 * jax.random.normal(k_b, (1, C), dtype=jnp.float32)

    loss_soft = logit_distillation_loss(
        inputs, teacher_w, teacher_b, outputs, outputs_kd, labels,
        distillation_type="soft", alpha=0.5, tau=2.0)
    loss_hard = logit_distillation_loss(
        inputs, teacher_w, teacher_b, outputs, outputs_kd, labels,
        distillation_type="hard", alpha=0.5, tau=2.0)
    loss_none = logit_distillation_loss(
        inputs, teacher_w, teacher_b, outputs, outputs_kd, labels,
        distillation_type="none", alpha=0.5, tau=2.0)

    jax.block_until_ready((loss_soft, loss_hard, loss_none))
    print("KERNEL_OK")
</pallas_src>

<mosaic_0001>
module attributes {stable_mosaic.version = 11 : i64} {
  func.func @_distill_kernel(%arg0: i32, %arg1: memref<16x128xbf16, #tpu.memory_space<vmem>>, %arg2: memref<128x16xbf16, #tpu.memory_space<vmem>>, %arg3: memref<1x16xf32, #tpu.memory_space<vmem>>, %arg4: memref<16x16xf32, #tpu.memory_space<vmem>>, %arg5: memref<16x16xf32, #tpu.memory_space<vmem>>, %arg6: memref<16x1xi32, #tpu.memory_space<vmem>>, %arg7: memref<1x128xf32, #tpu.memory_space<vmem>>) attributes {dimension_semantics = [#tpu.dimension_semantics<parallel>], iteration_bounds = array<i64: 1>, scalar_prefetch = 0 : i64, scratch_operands = 0 : i64, tpu.core_type = #tpu.core_type<tc>, window_params = [{transform_indices = @transform_0, window_bounds = array<i64: 16, 128>}, {pipeline_mode = #tpu.pipeline_mode<synchronous>, transform_indices = @transform_1, window_bounds = array<i64: 128, 16>}, {pipeline_mode = #tpu.pipeline_mode<synchronous>, transform_indices = @transform_2, window_bounds = array<i64: 1, 16>}, {transform_indices = @transform_3, window_bounds = array<i64: 16, 16>}, {transform_indices = @transform_4, window_bounds = array<i64: 16, 16>}, {transform_indices = @transform_5, window_bounds = array<i64: 16, 1>}, {transform_indices = @transform_6, window_bounds = array<i64: 1, 128>}]} {
    %c0 = arith.constant 0 : index
    %c0_0 = arith.constant 0 : index
    %0 = vector.load %arg4[%c0, %c0_0] : memref<16x16xf32, #tpu.memory_space<vmem>>, vector<16x16xf32>
    %c0_1 = arith.constant 0 : index
    %c0_2 = arith.constant 0 : index
    %1 = vector.load %arg5[%c0_1, %c0_2] : memref<16x16xf32, #tpu.memory_space<vmem>>, vector<16x16xf32>
    %c0_3 = arith.constant 0 : index
    %c0_4 = arith.constant 0 : index
    %2 = vector.load %arg6[%c0_3, %c0_4] : memref<16x1xi32, #tpu.memory_space<vmem>>, vector<16x1xi32>
    %3 = tpu.iota {dimensions = array<i32: 0>} : vector<16x1xi32>
    %c16_i32 = arith.constant 16 : i32
    %4 = arith.muli %arg0, %c16_i32 : i32
    %5 = vector.broadcast %4 : i32 to vector<16x1xi32>
    %6 = arith.addi %5, %3 : vector<16x1xi32>
    %c8_i32 = arith.constant 8 : i32
    %7 = vector.broadcast %c8_i32 : i32 to vector<16x1xi32>
    %8 = arith.cmpi slt, %6, %7 : vector<16x1xi32>
    %9 = arith.extui %8 : vector<16x1xi1> to vector<16x1xi32>
    %10 = arith.sitofp %9 : vector<16x1xi32> to vector<16x1xf32>
    %11 = tpu.iota {dimensions = array<i32: 1>} : vector<16x16xi32>
    %cst = arith.constant dense<0xFF800000> : vector<16xf32>
    %12 = vector.multi_reduction <maximumf>, %0, %cst [1] : vector<16x16xf32> to vector<16xf32>
    %13 = vector.shape_cast %12 : vector<16xf32> to vector<16x1xf32>
    %14 = vector.broadcast %13 : vector<16x1xf32> to vector<16x16xf32>
    %15 = arith.subf %0, %14 : vector<16x16xf32>
    %16 = math.exp %15 : vector<16x16xf32>
    %cst_5 = arith.constant dense<0.000000e+00> : vector<16xf32>
    %17 = vector.multi_reduction <add>, %16, %cst_5 [1] : vector<16x16xf32> to vector<16xf32>
    %18 = vector.shape_cast %17 : vector<16xf32> to vector<16x1xf32>
    %19 = math.log %18 : vector<16x1xf32>
    %20 = arith.addf %13, %19 : vector<16x1xf32>
    %21 = vector.broadcast %2 : vector<16x1xi32> to vector<16x16xi32>
    %22 = arith.cmpi eq, %11, %21 : vector<16x16xi32>
    %cst_6 = arith.constant 0.000000e+00 : f32
    %23 = vector.broadcast %cst_6 : f32 to vector<16x16xf32>
    %24 = arith.select %22, %0, %23 : vector<16x16xi1>, vector<16x16xf32>
    %cst_7 = arith.constant dense<0.000000e+00> : vector<16xf32>
    %25 = vector.multi_reduction <add>, %24, %cst_7 [1] : vector<16x16xf32> to vector<16xf32>
    %26 = vector.shape_cast %25 : vector<16xf32> to vector<16x1xf32>
    %27 = arith.subf %20, %26 : vector<16x1xf32>
    %28 = arith.mulf %27, %10 : vector<16x1xf32>
    %29 = vector.shape_cast %28 : vector<16x1xf32> to vector<1x16x1xf32>
    %cst_8 = arith.constant dense<0.000000e+00> : vector<1xf32>
    %30 = vector.multi_reduction <add>, %29, %cst_8 [1, 2] : vector<1x16x1xf32> to vector<1xf32>
    %31 = vector.shape_cast %30 : vector<1xf32> to vector<1x1x1xf32>
    %32 = vector.extract %31[0, 0, 0] : f32 from vector<1x1x1xf32>
    %c0_9 = arith.constant 0 : index
    %c0_10 = arith.constant 0 : index
    %33 = vector.load %arg1[%c0_9, %c0_10] : memref<16x128xbf16, #tpu.memory_space<vmem>>, vector<16x128xbf16>
    %c0_11 = arith.constant 0 : index
    %c0_12 = arith.constant 0 : index
    %34 = vector.load %arg2[%c0_11, %c0_12] : memref<128x16xbf16, #tpu.memory_space<vmem>>, vector<128x16xbf16>
    %cst_13 = arith.constant dense<0.000000e+00> : vector<16x16xf32>
    %35 = tpu.matmul %33, %34, %cst_13 {dimension_numbers = #tpu.dot_dimension_numbers<[1], [0], [0], [1], [0, 0, 1, 1], [], []>} : vector<16x128xbf16>, vector<128x16xbf16>, vector<16x16xf32> -> vector<16x16xf32>
    %c0_14 = arith.constant 0 : index
    %c0_15 = arith.constant 0 : index
    %36 = vector.load %arg3[%c0_14, %c0_15] : memref<1x16xf32, #tpu.memory_space<vmem>>, vector<1x16xf32>
    %37 = vector.broadcast %36 : vector<1x16xf32> to vector<16x16xf32>
    %38 = arith.addf %35, %37 : vector<16x16xf32>
    %cst_16 = arith.constant 5.000000e-01 : f32
    %39 = vector.broadcast %cst_16 : f32 to vector<16x16xf32>
    %40 = arith.mulf %1, %39 : vector<16x16xf32>
    %cst_17 = arith.constant dense<0xFF800000> : vector<16xf32>
    %41 = vector.multi_reduction <maximumf>, %40, %cst_17 [1] : vector<16x16xf32> to vector<16xf32>
    %42 = vector.shape_cast %41 : vector<16xf32> to vector<16x1xf32>
    %cst_18 = arith.constant dense<0xFF800000> : vector<16xf32>
    %43 = vector.multi_reduction <maximumf>, %38, %cst_18 [1] : vector<16x16xf32> to vector<16xf32>
    %44 = vector.shape_cast %43 : vector<16xf32> to vector<16x1xf32>
    %45 = vector.broadcast %44 : vector<16x1xf32> to vector<16x16xf32>
    %46 = arith.subf %38, %45 : vector<16x16xf32>
    %47 = math.exp %46 : vector<16x16xf32>
    %48 = vector.broadcast %42 : vector<16x1xf32> to vector<16x16xf32>
    %49 = arith.subf %40, %48 : vector<16x16xf32>
    %50 = math.exp %49 : vector<16x16xf32>
    %cst_19 = arith.constant dense<0.000000e+00> : vector<16xf32>
    %51 = vector.multi_reduction <add>, %50, %cst_19 [1] : vector<16x16xf32> to vector<16xf32>
    %52 = vector.shape_cast %51 : vector<16xf32> to vector<16x1xf32>
    %cst_20 = arith.constant dense<0.000000e+00> : vector<16xf32>
    %53 = vector.multi_reduction <add>, %47, %cst_20 [1] : vector<16x16xf32> to vector<16xf32>
    %54 = vector.shape_cast %53 : vector<16xf32> to vector<16x1xf32>
    %55 = arith.subf %38, %40 : vector<16x16xf32>
    %56 = arith.subf %44, %42 : vector<16x1xf32>
    %57 = vector.broadcast %56 : vector<16x1xf32> to vector<16x16xf32>
    %58 = arith.subf %55, %57 : vector<16x16xf32>
    %59 = math.log %54 : vector<16x1xf32>
    %60 = math.log %52 : vector<16x1xf32>
    %61 = arith.subf %59, %60 : vector<16x1xf32>
    %62 = vector.broadcast %61 : vector<16x1xf32> to vector<16x16xf32>
    %63 = arith.subf %58, %62 : vector<16x16xf32>
    %64 = arith.mulf %47, %63 : vector<16x16xf32>
    %cst_21 = arith.constant dense<0.000000e+00> : vector<16xf32>
    %65 = vector.multi_reduction <add>, %64, %cst_21 [1] : vector<16x16xf32> to vector<16xf32>
    %66 = vector.shape_cast %65 : vector<16xf32> to vector<16x1xf32>
    %67 = tpu.reciprocal %54 {approx = true} : vector<16x1xf32> -> vector<16x1xf32>
    %68 = arith.mulf %66, %67 : vector<16x1xf32>
    %69 = arith.mulf %68, %10 : vector<16x1xf32>
    %70 = vector.shape_cast %69 : vector<16x1xf32> to vector<1x16x1xf32>
    %cst_22 = arith.constant dense<0.000000e+00> : vector<1xf32>
    %71 = vector.multi_reduction <add>, %70, %cst_22 [1, 2] : vector<1x16x1xf32> to vector<1xf32>
    %72 = vector.shape_cast %71 : vector<1xf32> to vector<1x1x1xf32>
    %73 = vector.extract %72[0, 0, 0] : f32 from vector<1x1x1xf32>
    %cst_23 = arith.constant 6.250000e-02 : f32
    %74 = arith.mulf %cst_23, %32 : f32
    %cst_24 = arith.constant 1.562500e-02 : f32
    %75 = arith.mulf %cst_24, %73 : f32
    %76 = arith.addf %74, %75 : f32
    %77 = tpu.iota {dimensions = array<i32: 1>} : vector<1x128xi32>
    %c0_i32 = arith.constant 0 : i32
    %78 = vector.broadcast %c0_i32 : i32 to vector<1x128xi32>
    %79 = arith.cmpi eq, %77, %78 : vector<1x128xi32>
    %cst_25 = arith.constant 0.000000e+00 : f32
    %80 = vector.broadcast %76 : f32 to vector<1x128xf32>
    %81 = vector.broadcast %cst_25 : f32 to vector<1x128xf32>
    %82 = arith.select %79, %80, %81 : vector<1x128xi1>, vector<1x128xf32>
    %c0_26 = arith.constant 0 : index
    %c0_27 = arith.constant 0 : index
    %83 = vector.load %arg7[%c0_26, %c0_27] : memref<1x128xf32, #tpu.memory_space<vmem>>, vector<1x128xf32>
    tpu.vector_store %arg7[%c0_26, %c0_27], %82 {strides = array<i32>} : memref<1x128xf32, #tpu.memory_space<vmem>>, vector<1x128xf32>,
    return
  }
  func.func @transform_0(%arg0: i32) -> (i32, i32) {
    %c0_i32 = arith.constant 0 : i32
    %c0_i32_0 = arith.constant 0 : i32
    return %arg0, %c0_i32 : i32, i32
  }
  func.func @transform_1(%arg0: i32) -> (i32, i32) {
    %c0_i32 = arith.constant 0 : i32
    %c0_i32_0 = arith.constant 0 : i32
    %c0_i32_1 = arith.constant 0 : i32
    return %c0_i32, %c0_i32_0 : i32, i32
  }
  func.func @transform_2(%arg0: i32) -> (i32, i32) {
    %c0_i32 = arith.constant 0 : i32
    %c0_i32_0 = arith.constant 0 : i32
    %c0_i32_1 = arith.constant 0 : i32
    return %c0_i32, %c0_i32_0 : i32, i32
  }
  func.func @transform_3(%arg0: i32) -> (i32, i32) {
    %c0_i32 = arith.constant 0 : i32
    %c0_i32_0 = arith.constant 0 : i32
    return %arg0, %c0_i32 : i32, i32
  }
  func.func @transform_4(%arg0: i32) -> (i32, i32) {
    %c0_i32 = arith.constant 0 : i32
    %c0_i32_0 = arith.constant 0 : i32
    return %arg0, %c0_i32 : i32, i32
  }
  func.func @transform_5(%arg0: i32) -> (i32, i32) {
    %c0_i32 = arith.constant 0 : i32
    %c0_i32_0 = arith.constant 0 : i32
    return %arg0, %c0_i32 : i32, i32
  }
  func.func @transform_6(%arg0: i32) -> (i32, i32) {
    %c0_i32 = arith.constant 0 : i32
    %c0_i32_0 = arith.constant 0 : i32
    return %arg0, %c0_i32 : i32, i32
  }
}

module attributes {stable_mosaic.version = 11 : i64} {
  func.func @_distill_kernel(%arg0: i32, %arg1: memref<16x128xbf16, #tpu.memory_space<vmem>>, %arg2: memref<128x16xbf16, #tpu.memory_space<vmem>>, %arg3: memref<1x16xf32, #tpu.memory_space<vmem>>, %arg4: memref<16x16xf32, #tpu.memory_space<vmem>>, %arg5: memref<16x16xf32, #tpu.memory_space<vmem>>, %arg6: memref<16x1xi32, #tpu.memory_space<vmem>>, %arg7: memref<1x128xf32, #tpu.memory_space<vmem>>) attributes {dimension_semantics = [#tpu.dimension_semantics<parallel>], iteration_bounds = array<i64: 1>, scalar_prefetch = 0 : i64, scratch_operands = 0 : i64, tpu.core_type = #tpu.core_type<tc>, window_params = [{transform_indices = @transform_0, window_bounds = array<i64: 16, 128>}, {pipeline_mode = #tpu.pipeline_mode<synchronous>, transform_indices = @transform_1, window_bounds = array<i64: 128, 16>}, {pipeline_mode = #tpu.pipeline_mode<synchronous>, transform_indices = @transform_2, window_bounds = array<i64: 1, 16>}, {transform_indices = @transform_3, window_bounds = array<i64: 16, 16>}, {transform_indices = @transform_4, window_bounds = array<i64: 16, 16>}, {transform_indices = @transform_5, window_bounds = array<i64: 16, 1>}, {transform_indices = @transform_6, window_bounds = array<i64: 1, 128>}]} {
    %c0 = arith.constant 0 : index
    %c0_0 = arith.constant 0 : index
    %0 = vector.load %arg4[%c0, %c0_0] : memref<16x16xf32, #tpu.memory_space<vmem>>, vector<16x16xf32>
    %c0_1 = arith.constant 0 : index
    %c0_2 = arith.constant 0 : index
    %1 = vector.load %arg5[%c0_1, %c0_2] : memref<16x16xf32, #tpu.memory_space<vmem>>, vector<16x16xf32>
    %c0_3 = arith.constant 0 : index
    %c0_4 = arith.constant 0 : index
    %2 = vector.load %arg6[%c0_3, %c0_4] : memref<16x1xi32, #tpu.memory_space<vmem>>, vector<16x1xi32>
    %3 = tpu.iota {dimensions = array<i32: 0>} : vector<16x1xi32>
    %c16_i32 = arith.constant 16 : i32
    %4 = arith.muli %arg0, %c16_i32 : i32
    %5 = vector.broadcast %4 : i32 to vector<16x1xi32>
    %6 = arith.addi %5, %3 : vector<16x1xi32>
    %c8_i32 = arith.constant 8 : i32
    %7 = vector.broadcast %c8_i32 : i32 to vector<16x1xi32>
    %8 = arith.cmpi slt, %6, %7 : vector<16x1xi32>
    %9 = arith.extui %8 : vector<16x1xi1> to vector<16x1xi32>
    %10 = arith.sitofp %9 : vector<16x1xi32> to vector<16x1xf32>
    %11 = tpu.iota {dimensions = array<i32: 1>} : vector<16x16xi32>
    %cst = arith.constant dense<0xFF800000> : vector<16xf32>
    %12 = vector.multi_reduction <maximumf>, %0, %cst [1] : vector<16x16xf32> to vector<16xf32>
    %13 = vector.shape_cast %12 : vector<16xf32> to vector<16x1xf32>
    %14 = vector.broadcast %13 : vector<16x1xf32> to vector<16x16xf32>
    %15 = arith.subf %0, %14 : vector<16x16xf32>
    %16 = math.exp %15 : vector<16x16xf32>
    %cst_5 = arith.constant dense<0.000000e+00> : vector<16xf32>
    %17 = vector.multi_reduction <add>, %16, %cst_5 [1] : vector<16x16xf32> to vector<16xf32>
    %18 = vector.shape_cast %17 : vector<16xf32> to vector<16x1xf32>
    %19 = math.log %18 : vector<16x1xf32>
    %20 = arith.addf %13, %19 : vector<16x1xf32>
    %21 = vector.broadcast %2 : vector<16x1xi32> to vector<16x16xi32>
    %22 = arith.cmpi eq, %11, %21 : vector<16x16xi32>
    %cst_6 = arith.constant 0.000000e+00 : f32
    %23 = vector.broadcast %cst_6 : f32 to vector<16x16xf32>
    %24 = arith.select %22, %0, %23 : vector<16x16xi1>, vector<16x16xf32>
    %cst_7 = arith.constant dense<0.000000e+00> : vector<16xf32>
    %25 = vector.multi_reduction <add>, %24, %cst_7 [1] : vector<16x16xf32> to vector<16xf32>
    %26 = vector.shape_cast %25 : vector<16xf32> to vector<16x1xf32>
    %27 = arith.subf %20, %26 : vector<16x1xf32>
    %28 = arith.mulf %27, %10 : vector<16x1xf32>
    %29 = vector.shape_cast %28 : vector<16x1xf32> to vector<1x16x1xf32>
    %cst_8 = arith.constant dense<0.000000e+00> : vector<1xf32>
    %30 = vector.multi_reduction <add>, %29, %cst_8 [1, 2] : vector<1x16x1xf32> to vector<1xf32>
    %31 = vector.shape_cast %30 : vector<1xf32> to vector<1x1x1xf32>
    %32 = vector.extract %31[0, 0, 0] : f32 from vector<1x1x1xf32>
    %c0_9 = arith.constant 0 : index
    %c0_10 = arith.constant 0 : index
    %33 = vector.load %arg1[%c0_9, %c0_10] : memref<16x128xbf16, #tpu.memory_space<vmem>>, vector<16x128xbf16>
    %c0_11 = arith.constant 0 : index
    %c0_12 = arith.constant 0 : index
    %34 = vector.load %arg2[%c0_11, %c0_12] : memref<128x16xbf16, #tpu.memory_space<vmem>>, vector<128x16xbf16>
    %cst_13 = arith.constant dense<0.000000e+00> : vector<16x16xf32>
    %35 = tpu.matmul %33, %34, %cst_13 {dimension_numbers = #tpu.dot_dimension_numbers<[1], [0], [0], [1], [0, 0, 1, 1], [], []>} : vector<16x128xbf16>, vector<128x16xbf16>, vector<16x16xf32> -> vector<16x16xf32>
    %c0_14 = arith.constant 0 : index
    %c0_15 = arith.constant 0 : index
    %36 = vector.load %arg3[%c0_14, %c0_15] : memref<1x16xf32, #tpu.memory_space<vmem>>, vector<1x16xf32>
    %37 = vector.broadcast %36 : vector<1x16xf32> to vector<16x16xf32>
    %38 = arith.addf %35, %37 : vector<16x16xf32>
    %cst_16 = arith.constant 5.000000e-01 : f32
    %39 = vector.broadcast %cst_16 : f32 to vector<16x16xf32>
    %40 = arith.mulf %1, %39 : vector<16x16xf32>
    %cst_17 = arith.constant dense<0xFF800000> : vector<16xf32>
    %41 = vector.multi_reduction <maximumf>, %40, %cst_17 [1] : vector<16x16xf32> to vector<16xf32>
    %42 = vector.shape_cast %41 : vector<16xf32> to vector<16x1xf32>
    %cst_18 = arith.constant dense<0xFF800000> : vector<16xf32>
    %43 = vector.multi_reduction <maximumf>, %38, %cst_18 [1] : vector<16x16xf32> to vector<16xf32>
    %44 = vector.shape_cast %43 : vector<16xf32> to vector<16x1xf32>
    %45 = vector.broadcast %44 : vector<16x1xf32> to vector<16x16xf32>
    %46 = arith.subf %38, %45 : vector<16x16xf32>
    %47 = math.exp %46 : vector<16x16xf32>
    %48 = vector.broadcast %42 : vector<16x1xf32> to vector<16x16xf32>
    %49 = arith.subf %40, %48 : vector<16x16xf32>
    %50 = math.exp %49 : vector<16x16xf32>
    %cst_19 = arith.constant dense<0.000000e+00> : vector<16xf32>
    %51 = vector.multi_reduction <add>, %50, %cst_19 [1] : vector<16x16xf32> to vector<16xf32>
    %52 = vector.shape_cast %51 : vector<16xf32> to vector<16x1xf32>
    %cst_20 = arith.constant dense<0.000000e+00> : vector<16xf32>
    %53 = vector.multi_reduction <add>, %47, %cst_20 [1] : vector<16x16xf32> to vector<16xf32>
    %54 = vector.shape_cast %53 : vector<16xf32> to vector<16x1xf32>
    %55 = arith.subf %38, %40 : vector<16x16xf32>
    %56 = arith.subf %44, %42 : vector<16x1xf32>
    %57 = vector.broadcast %56 : vector<16x1xf32> to vector<16x16xf32>
    %58 = arith.subf %55, %57 : vector<16x16xf32>
    %59 = math.log %54 : vector<16x1xf32>
    %60 = math.log %52 : vector<16x1xf32>
    %61 = arith.subf %59, %60 : vector<16x1xf32>
    %62 = vector.broadcast %61 : vector<16x1xf32> to vector<16x16xf32>
    %63 = arith.subf %58, %62 : vector<16x16xf32>
    %64 = arith.mulf %47, %63 : vector<16x16xf32>
    %cst_21 = arith.constant dense<0.000000e+00> : vector<16xf32>
    %65 = vector.multi_reduction <add>, %64, %cst_21 [1] : vector<16x16xf32> to vector<16xf32>
    %66 = vector.shape_cast %65 : vector<16xf32> to vector<16x1xf32>
    %67 = tpu.reciprocal %54 {approx = true} : vector<16x1xf32> -> vector<16x1xf32>
    %68 = arith.mulf %66, %67 : vector<16x1xf32>
    %69 = arith.mulf %68, %10 : vector<16x1xf32>
    %70 = vector.shape_cast %69 : vector<16x1xf32> to vector<1x16x1xf32>
    %cst_22 = arith.constant dense<0.000000e+00> : vector<1xf32>
    %71 = vector.multi_reduction <add>, %70, %cst_22 [1, 2] : vector<1x16x1xf32> to vector<1xf32>
    %72 = vector.shape_cast %71 : vector<1xf32> to vector<1x1x1xf32>
    %73 = vector.extract %72[0, 0, 0] : f32 from vector<1x1x1xf32>
    %cst_23 = arith.constant 6.250000e-02 : f32
    %74 = arith.mulf %cst_23, %32 : f32
    %cst_24 = arith.constant 1.562500e-02 : f32
    %75 = arith.mulf %cst_24, %73 : f32
    %76 = arith.addf %74, %75 : f32
    %77 = tpu.iota {dimensions = array<i32: 1>} : vector<1x128xi32>
    %c0_i32 = arith.constant 0 : i32
    %78 = vector.broadcast %c0_i32 : i32 to vector<1x128xi32>
    %79 = arith.cmpi eq, %77, %78 : vector<1x128xi32>
    %cst_25 = arith.constant 0.000000e+00 : f32
    %80 = vector.broadcast %76 : f32 to vector<1x128xf32>
    %81 = vector.broadcast %cst_25 : f32 to vector<1x128xf32>
    %82 = arith.select %79, %80, %81 : vector<1x128xi1>, vector<1x128xf32>
    %c0_26 = arith.constant 0 : index
    %c0_27 = arith.constant 0 : index
    %83 = vector.load %arg7[%c0_26, %c0_27] : memref<1x128xf32, #tpu.memory_space<vmem>>, vector<1x128xf32>
    tpu.vector_store %arg7[%c0_26, %c0_27], %82 {strides = array<i32>} : memref<1x128xf32, #tpu.memory_space<vmem>>, vector<1x128xf32>,
    return
  }
  func.func @transform_0(%arg0: i32) -> (i32, i32) {
    %c0_i32 = arith.constant 0 : i32
    %c0_i32_0 = arith.constant 0 : i32
    return %arg0, %c0_i32 : i32, i32
  }
  func.func @transform_1(%arg0: i32) -> (i32, i32) {
    %c0_i32 = arith.constant 0 : i32
    %c0_i32_0 = arith.constant 0 : i32
    %c0_i32_1 = arith.constant 0 : i32
    return %c0_i32, %c0_i32_0 : i32, i32
  }
  func.func @transform_2(%arg0: i32) -> (i32, i32) {
    %c0_i32 = arith.constant 0 : i32
    %c0_i32_0 = arith.constant 0 : i32
    %c0_i32_1 = arith.constant 0 : i32
    return %c0_i32, %c0_i32_0 : i32, i32
  }
  func.func @transform_3(%arg0: i32) -> (i32, i32) {
    %c0_i32 = arith.constant 0 : i32
    %c0_i32_0 = arith.constant 0 : i32
    return %arg0, %c0_i32 : i32, i32
  }
  func.func @transform_4(%arg0: i32) -> (i32, i32) {
    %c0_i32 = arith.constant 0 : i32
    %c0_i32_0 = arith.constant 0 : i32
    return %arg0, %c0_i32 : i32, i32
  }
  func.func @transform_5(%arg0: i32) -> (i32, i32) {
    %c0_i32 = arith.constant 0 : i32
    %c0_i32_0 = arith.constant 0 : i32
    return %arg0, %c0_i32 : i32, i32
  }
  func.func @transform_6(%arg0: i32) -> (i32, i32) {
    %c0_i32 = arith.constant 0 : i32
    %c0_i32_0 = arith.constant 0 : i32
    return %arg0, %c0_i32 : i32, i32
  }
}

</mosaic_0001>

<bundles_post_ra>
// kernel: tpu_custom_call.1
= control target key start
LH: loop header
LB: loop body
LE: loop exit
PB: predicated region body
PF: predicated region fallthrough
CT: control target
= control target key end

     0   :  { %vm45_vm0 = vcmask 130048   ;;  %s557_s0 = inlined_call_operand.vmem [shape: bf16[16,128], index: 0, kind: input, shape index: {}]   ;;  %s558_s1 = inlined_call_operand.vmem [shape: bf16[128,16], index: 1, kind: input, shape index: {}]   ;;  %s559_s2 = inlined_call_operand.vmem [shape: f32[1,16], index: 2, kind: input, shape index: {}]   ;;  %s560_s3 = inlined_call_operand.vmem [shape: f32[16,16], index: 3, kind: input, shape index: {}]   ;;  %s561_s4 = inlined_call_operand.vmem [shape: f32[16,16], index: 4, kind: input, shape index: {}]   ;;  %s562_s5 = inlined_call_operand.vmem [shape: s32[16,1], index: 5, kind: input, shape index: {}]   ;;  %s563_s6 = inlined_call_operand.hbm [shape: f32[1,128], index: 6, kind: output, shape index: {}]  }
   0x1   :  { %v342_v0 = vld [vmem:[%s558_s1 + $0x38] sm:$0xff]  ;;  %v341_v1 = vld [vmem:[%s558_s1 + $0x30] sm:$0xff]  ;;  %v26_v2 = vld [vmem:[%s561_s4] sm:$0xff] }
   0x2   :  { %179 = vmatpush.bf16.msra.mxu0 %v342_v0  ;;  %v27_v3 = vld [vmem:[%s561_s4 + $0x8] sm:$0xff]  ;;  %v456_v4 = vmul.f32 0.5, %v26_v2 }
   0x3   :  { %v458_v5 = vmul.f32 0.5, %v27_v3 }
   0x4   :  { %11 = vsyncpa [#allocation3], 0  ;;  %v340_v6 = vld [vmem:[%s558_s1 + $0x28] sm:$0xff]  ;;  %v195_v7 = vsel %vm45_vm0, %v456_v4, -inf  ;;  %v339_v9 = vld [vmem:[%s558_s1 + $0x20] sm:$0xff]  ;;  %v407_v19 = vmov 0   ;;  %v43_v60 = vlaneseq }
   0x5   :  { %v198_v8 = vsel %vm45_vm0, %v458_v5, -inf  ;;  %196 = vmax.xlane.f32.xlu1 %v195_v7  ;;  %v338_v10 = vld [vmem:[%s558_s1 + $0x18] sm:$0xff]  ;;  %v337_v11 = vld [vmem:[%s558_s1 + $0x10] sm:$0xff]  ;;  %v336_v12 = vld [vmem:[%s558_s1 + $0x8] sm:$0xff]  ;;  %350 = vset.pattern.permute.xlu2 %v407_v19  ;;  %vm90_vm3 = vcmask 7168   ;;  %s408_s27 = smov [#allocation2]  }
   0x6   :  { %180 = vmatpush.bf16.msra.mxu0 %v341_v1  ;;  %199 = vmax.xlane.f32.xlu0 %v198_v8  ;;  %v335_v13 = vld [vmem:[%s558_s1] sm:$0xff]  ;;  %v488_v15 = vld [vmem:[%s560_s3 + $0x8] sm:$0xff]  ;;  %v536_v61 = vand.u32 127, %v43_v60  ;;  %s287_s28 = sshll.u32 %s408_s27, 4  ;;  %s289_s4 = sshll.u32 %s563_s6, 4  ;;  %s288_s28 = int_to_ptr.vmem [resolvable:$true] %s287_s28  ;;  %s290_s4 = int_to_ptr.hbm [resolvable:$true] %s289_s4 }
   0x7   :  { %v334_v14 = vld [vmem:[%s557_s0] sm:$0xff]  ;;  %v49_v16 = vsel %vm45_vm0, %v488_v15, -inf  ;;  %349 = vset.pattern.permute.xlu1 %v407_v19  ;;  %351 = vset.pattern.permute.xlu0 %v407_v19  ;;  %v29_v58 = vld [vmem:[%s562_s5 + $0x8] sm:$0xff] }
   0x8   :  { %50 = vmax.xlane.f32.xlu2 %v49_v16  ;;  %v24_v20 = vld [vmem:[%s560_s3] sm:$0xff]  ;;  %vm278_vm4 = vcmp.eq.s32.totalorder %v536_v61, 0 }
   0x9   :  { %v46_v22 = vsel %vm45_vm0, %v24_v20, -inf  ;;  %v352_v25 = vld [vmem:[%s559_s2] ss:$0 sm:$0xff] }
   0xa   :  { %181 = vmatpush.bf16.msra.mxu0 %v340_v6  ;;  %v28_v32 = vld [vmem:[%s562_s5] sm:$0xff] }
   0xe   :  { %182 = vmatpush.bf16.msra.mxu0 %v339_v9 }
  0x10   :  { %47 = vmax.xlane.f32.xlu2 %v46_v22 }
  0x12   :  { %183 = vmatpush.bf16.msra.mxu0 %v338_v10 }
  0x16   :  { %184 = vmatpush.bf16.msra.mxu0 %v337_v11 }
  0x1a   :  { %185 = vmatpush.bf16.msra.mxu0 %v336_v12 }
  0x1e   :  { %186 = vmatpush.bf16.msra.mxu0 %v335_v13 }
  0x21   :  { %187 = vmatmul.bf16.vlgmr.msra.gmra.mxu0 %v334_v14 }
  0x78   :  { %v492_v17 = vpop.xlane.xlu1 %196 }
  0x79   :  { %v213_v18 = vsub.f32 %v456_v4, %v492_v17  ;;  %v200_v33 = vpop.xlane.xlu0 %199 }
  0x7a   :  { %v214_v34 = vsub.f32 %v458_v5, %v200_v33 }
  0x7b   :  { %v215_v21 = vmul.f32 1.442695, %v213_v18  ;;  %v517_v38 = vpop.xlane.xlu2 %50 }
  0x7c   :  { %v217_v35 = vmul.f32 1.442695, %v214_v34  ;;  %v53_v41 = vsub.f32 %v488_v15, %v517_v38 }
  0x7d   :  { %353 = vpow2.f32 %v215_v21 }
  0x7e   :  { %355 = vpow2.f32 %v217_v35  ;;  %v56_v43 = vmul.f32 1.442695, %v53_v41 }
  0x83   :  { %v354_v23 = vpop.eup %353  ;;  %v525_v44 = vpop.xlane.xlu2 %47 }
  0x84   :  { %v219_v24 = vsel %vm45_vm0, %v354_v23, 0.0  ;;  %v356_v36 = vpop.eup %355  ;;  %v52_v47 = vsub.f32 %v24_v20, %v525_v44 }
  0x85   :  { %220 = vadd.xlane.f32.xlu2 %v219_v24  ;;  %v222_v37 = vsel %vm45_vm0, %v356_v36, 0.0 }
  0x86   :  { %v54_v51 = vmul.f32 1.442695, %v52_v47 }
  0x9d   :  { %71 = vperm.xlu2 %350, %v28_v32  }
  0x9e   :  { %v188_v26 = vpop.f32.mrf.mxu0 }
  0x9f   :  { %v504_v27 = vadd.f32 %v352_v25, %v188_v26 }
  0xa1   :  { %v201_v28 = vsel %vm45_vm0, %v504_v27, -inf }
  0xa2   :  { %202 = vmax.xlane.f32.xlu1 %v201_v28 }
  0xa6   :  { %v190_v29 = vpop.f32.mrf.mxu0 }
  0xa7   :  { %v508_v30 = vadd.f32 %v352_v25, %v190_v29 }
  0xa9   :  { %v204_v31 = vsel %vm45_vm0, %v508_v30, -inf  ;;  %v232_v9 = vsub.f32 %v508_v30, %v458_v5  ;;  %v231_v5 = vsub.f32 %v504_v27, %v456_v4 }
  0xaa   :  { %205 = vmax.xlane.f32.xlu0 %v204_v31 }
  0xb2   :  { %223 = vadd.xlane.f32.xlu0 %v222_v37 }
  0xf8   :  { %v221_v59 = vpop.xlane.xlu2 %220 }
 0x100   :  { %v72_v62 = vpop.permute.xlu2 %71 }
 0x101   :  { %vm76_vm1 = vcmp.eq.s32.totalorder %v536_v61, %v72_v62 }
 0x102   :  { %v78_v63 = vsel %vm76_vm1, %v24_v20, 0.0 }
 0x103   :  { %v80_v0 = vsel %vm45_vm0, %v78_v63, 0.0 }
 0x115   :  { %v519_v39 = vpop.xlane.xlu1 %202 }
 0x116   :  { %v207_v40 = vsub.f32 %v504_v27, %v519_v39  ;;  %v233_v23 = vsub.f32 %v519_v39, %v492_v17 }
 0x118   :  { %v209_v42 = vmul.f32 1.442695, %v207_v40  ;;  %v235_v26 = vsub.f32 %v231_v5, %v233_v23 }
 0x11a   :  { %357 = vpow2.f32 %v209_v42 }
 0x11b   :  { %359 = vpow2.f32 %v56_v43 }
 0x11d   :  { %v206_v45 = vpop.xlane.xlu0 %205 }
 0x11e   :  { %v208_v46 = vsub.f32 %v508_v30, %v206_v45  ;;  %v234_v6 = vsub.f32 %v206_v45, %v200_v33 }
 0x120   :  { %v358_v48 = vpop.eup %357  ;;  %v211_v49 = vmul.f32 1.442695, %v208_v46  ;;  %v236_v12 = vsub.f32 %v232_v9, %v234_v6 }
 0x121   :  { %v225_v50 = vsel %vm45_vm0, %v358_v48, 0.0  ;;  %v360_v52 = vpop.eup %359 }
 0x122   :  { %361 = vpow2.f32 %v211_v49  ;;  %226 = vadd.xlane.f32.xlu0 %v225_v50  ;;  %v61_v53 = vsel %vm45_vm0, %v360_v52, 0.0 }
 0x123   :  { %363 = vpow2.f32 %v54_v51 }
 0x125   :  { %v224_v1 = vpop.xlane.xlu0 %223 }
 0x126   :  { %365 = vlog2.f32 %v224_v1 }
 0x128   :  { %v362_v54 = vpop.eup %361 }
 0x129   :  { %v228_v55 = vsel %vm45_vm0, %v362_v54, 0.0  ;;  %v364_v56 = vpop.eup %363 }
 0x12a   :  { %229 = vadd.xlane.f32.xlu1 %v228_v55  ;;  %62 = vadd.xlane.f32.xlu0 %v61_v53  ;;  %v58_v57 = vsel %vm45_vm0, %v364_v56, 0.0 }
 0x12c   :  { %v366_v3 = vpop.eup %365 }
 0x12d   :  { %v244_v10 = vmul.f32 0.6931472, %v366_v3 }
 0x132   :  { %59 = vadd.xlane.f32.xlu0 %v58_v57 }
 0x143   :  { %74 = vperm.xlu1 %349, %v29_v58  }
 0x16d   :  { %81 = vadd.xlane.f32.xlu1 %v80_v0 }
 0x195   :  { %v227_v8 = vpop.xlane.xlu0 %226 }
 0x19d   :  { %v230_v2 = vpop.xlane.xlu1 %229  ;;  %v63_v33 = vpop.xlane.xlu0 %62 }
 0x19e   :  { %367 = vlog2.f32 %v230_v2 }
 0x19f   :  { %369 = vlog2.f32 %v221_v59 }
 0x1a0   :  { %371 = vlog2.f32 %v227_v8 }
 0x1a1   :  { %373 = vlog2.f32 %v63_v33 }
 0x1a4   :  { %v368_v7 = vpop.eup %367 }
 0x1a5   :  { %v240_v11 = vmul.f32 0.6931472, %v368_v7  ;;  %v370_v18 = vpop.eup %369  ;;  %v60_v17 = vpop.xlane.xlu0 %59 }
 0x1a6   :  { %v372_v19 = vpop.eup %371  ;;  %v242_v21 = vmul.f32 0.6931472, %v370_v18  ;;  %375 = vlog2.f32 %v60_v17 }
 0x1a7   :  { %v246_v13 = vsub.f32 %v240_v11, %v244_v10  ;;  %v238_v22 = vmul.f32 0.6931472, %v372_v19  ;;  %v374_v4 = vpop.eup %373  ;;  %377 = vrcp.f32 %v230_v2 }
 0x1a8   :  { %v67_v34 = vmul.f32 0.6931472, %v374_v4  ;;  %379 = vrcp.f32 %v227_v8 }
 0x1a9   :  { %v248_v14 = vsub.f32 %v236_v12, %v246_v13  ;;  %v245_v24 = vsub.f32 %v238_v22, %v242_v21 }
 0x1aa   :  { %v69_v37 = vadd.f32 %v67_v34, %v517_v38 }
 0x1ab   :  { %v250_v16 = vmul.f32 %v362_v54, %v248_v14  ;;  %v247_v30 = vsub.f32 %v235_v26, %v245_v24 }
 0x1ac   :  { %v376_v27 = vpop.eup %375 }
 0x1ad   :  { %v254_v20 = vsel %vm45_vm0, %v250_v16, 0.0  ;;  %v249_v31 = vmul.f32 %v358_v48, %v247_v30  ;;  %v65_v35 = vmul.f32 0.6931472, %v376_v27  ;;  %v378_v43 = vpop.eup %377 }
 0x1ae   :  { %255 = vadd.xlane.f32.xlu2 %v254_v20  ;;  %v380_v51 = vpop.eup %379 }
 0x1af   :  { %v251_v32 = vsel %vm45_vm0, %v249_v31, 0.0 }
 0x1b5   :  { %v75_v25 = vpop.permute.xlu1 %74 }
 0x1b6   :  { %vm77_vm2 = vcmp.eq.s32.totalorder %v536_v61, %v75_v25 }
 0x1b7   :  { %v79_v28 = vsel %vm77_vm2, %v488_v15, 0.0  ;;  %v68_v15 = vadd.f32 %v65_v35, %v525_v44 }
 0x1b8   :  { %v83_v29 = vsel %vm45_vm0, %v79_v28, 0.0 }
 0x1b9   :  { %84 = vadd.xlane.f32.xlu0 %v83_v29 }
 0x1c1   :  { %252 = vadd.xlane.f32.xlu0 %v251_v32 }
 0x1e0   :  { %v82_v36 = vpop.xlane.xlu1 %81 }
 0x1e1   :  { %v86_v41 = vsub.f32 %v68_v15, %v82_v36 }
 0x1e3   :  { %v91_v47 = vsel %vm90_vm3, %v86_v41, 0.0 }
 0x221   :  { %v256_v39 = vpop.xlane.xlu2 %255 }
 0x222   :  { %v260_v45 = vmul.f32 %v378_v43, %v256_v39 }
 0x224   :  { %v262_v50 = vmul.f32 0.0, %v260_v45 }
 0x226   :  { %v264_v54 = vsel %vm90_vm3, %v262_v50, 0.0 }
 0x22c   :  { %v85_v40 = vpop.xlane.xlu0 %84 }
 0x22d   :  { %v87_v42 = vsub.f32 %v69_v37, %v85_v40 }
 0x22f   :  { %v89_v46 = vmul.f32 0.0, %v87_v42 }
 0x231   :  { %v92_v48 = vsel %vm90_vm3, %v89_v46, 0.0 }
 0x232   :  { %v93_v49 = vadd.f32 %v92_v48, %v91_v47 }
 0x234   :  { %v253_v52 = vpop.xlane.xlu0 %252  ;;  %94 = vadd.xlane.f32.xlu0 %v93_v49 }
 0x235   :  { %v259_v53 = vmul.f32 %v380_v51, %v253_v52 }
 0x237   :  { %v263_v44 = vsel %vm90_vm3, %v259_v53, 0.0 }
 0x238   :  { %v265_v38 = vadd.f32 %v264_v54, %v263_v44 }
 0x23c   :  { %266 = vadd.xlane.f32.xlu0 %v265_v38 }
 0x2a7   :  { %v95_v55 = vpop.xlane.xlu0 %94 }
 0x2a8   :  { %v96_v56 = vrot.slane %v95_v55, 4 }
 0x2aa   :  { %v97_v57 = vadd.f32 %v96_v56, %v95_v55 }
 0x2ac   :  { %v98_v58 = vrot.slane %v97_v57, 2 }
 0x2ae   :  { %v99_v59 = vadd.f32 %v98_v58, %v97_v57 }
 0x2af   :  { %v267_v60 = vpop.xlane.xlu0 %266 }
 0x2b0   :  { %v268_v62 = vrot.slane %v267_v60, 4  ;;  %v100_v63 = vrot.slane %v99_v59, 1 }
 0x2b2   :  { %v269_v0 = vadd.f32 %v268_v62, %v267_v60  ;;  %v101_v1 = vadd.f32 %v100_v63, %v99_v59 }
 0x2b4   :  { %v270_v2 = vrot.slane %v269_v0, 2  ;;  %343 = vpush %v101_v1 }
 0x2b6   :  { %v271_v3 = vadd.f32 %v270_v2, %v269_v0 }
 0x2b8   :  { %v272_v6 = vrot.slane %v271_v3, 1 }
 0x2ba   :  { %v273_v7 = vadd.f32 %v272_v6, %v271_v3 }
 0x2bc   :  { %345 = vpush %v273_v7 }
 0x2e5   :  { %s344_s5 = spop %343 }
 0x2e6   :  { %s275_s24 = smul.f32 0.0625, %s344_s5 }
 0x2ed   :  { %s346_s25 = spop %345 }
 0x2ee   :  { %s276_s26 = smul.f32 0.015625, %s346_s25 }
 0x2f0   :  { %s277_s7 = sadd.f32 %s276_s26, %s275_s24 }
 0x2f2   :  { %v279_v8 = vstv %s277_s7 }
 0x2f3   :  { %v280_v9 = vsel %vm278_vm4, %v279_v8, 0.0 }
 0x2f4   :  { %281 = vst [vmem:[#allocation2] sm:$0x1] %v280_v9 }
 0x2f5   :  { %292 = dma.vmem_to_hbm [thread:$0]  %s288_s28, 16, %s290_s4, [#allocation3]  }
 0x2f6   :  { %405 = dma.done.wait [#allocation3], 16  }
 0x2f7   :  { %406 = vsyncadd [#allocation3], 4294967280 }
 0x2f8   :  { %297 = vsyncpa [#allocation3], 1 }

// kernel: tpu_custom_call.1
= control target key start
LH: loop header
LB: loop body
LE: loop exit
PB: predicated region body
PF: predicated region fallthrough
CT: control target
= control target key end

     0   :  { %vm45_vm0 = vcmask 130048   ;;  %s557_s0 = inlined_call_operand.vmem [shape: bf16[16,128], index: 0, kind: input, shape index: {}]   ;;  %s558_s1 = inlined_call_operand.vmem [shape: bf16[128,16], index: 1, kind: input, shape index: {}]   ;;  %s559_s2 = inlined_call_operand.vmem [shape: f32[1,16], index: 2, kind: input, shape index: {}]   ;;  %s560_s3 = inlined_call_operand.vmem [shape: f32[16,16], index: 3, kind: input, shape index: {}]   ;;  %s561_s4 = inlined_call_operand.vmem [shape: f32[16,16], index: 4, kind: input, shape index: {}]   ;;  %s562_s5 = inlined_call_operand.vmem [shape: s32[16,1], index: 5, kind: input, shape index: {}]   ;;  %s563_s6 = inlined_call_operand.hbm [shape: f32[1,128], index: 6, kind: output, shape index: {}]  }
   0x1   :  { %v342_v0 = vld [vmem:[%s558_s1 + $0x38] sm:$0xff]  ;;  %v341_v1 = vld [vmem:[%s558_s1 + $0x30] sm:$0xff]  ;;  %v26_v2 = vld [vmem:[%s561_s4] sm:$0xff] }
   0x2   :  { %179 = vmatpush.bf16.msra.mxu0 %v342_v0  ;;  %v27_v3 = vld [vmem:[%s561_s4 + $0x8] sm:$0xff]  ;;  %v456_v4 = vmul.f32 0.5, %v26_v2 }
   0x3   :  { %v458_v5 = vmul.f32 0.5, %v27_v3 }
   0x4   :  { %11 = vsyncpa [#allocation3], 0  ;;  %v340_v6 = vld [vmem:[%s558_s1 + $0x28] sm:$0xff]  ;;  %v195_v7 = vsel %vm45_vm0, %v456_v4, -inf  ;;  %v339_v9 = vld [vmem:[%s558_s1 + $0x20] sm:$0xff]  ;;  %v407_v19 = vmov 0   ;;  %v43_v60 = vlaneseq }
   0x5   :  { %v198_v8 = vsel %vm45_vm0, %v458_v5, -inf  ;;  %196 = vmax.xlane.f32.xlu1 %v195_v7  ;;  %v338_v10 = vld [vmem:[%s558_s1 + $0x18] sm:$0xff]  ;;  %v337_v11 = vld [vmem:[%s558_s1 + $0x10] sm:$0xff]  ;;  %v336_v12 = vld [vmem:[%s558_s1 + $0x8] sm:$0xff]  ;;  %350 = vset.pattern.permute.xlu2 %v407_v19  ;;  %vm90_vm3 = vcmask 7168   ;;  %s408_s27 = smov [#allocation2]  }
   0x6   :  { %180 = vmatpush.bf16.msra.mxu0 %v341_v1  ;;  %199 = vmax.xlane.f32.xlu0 %v198_v8  ;;  %v335_v13 = vld [vmem:[%s558_s1] sm:$0xff]  ;;  %v488_v15 = vld [vmem:[%s560_s3 + $0x8] sm:$0xff]  ;;  %v536_v61 = vand.u32 127, %v43_v60  ;;  %s287_s28 = sshll.u32 %s408_s27, 4  ;;  %s289_s4 = sshll.u32 %s563_s6, 4  ;;  %s288_s28 = int_to_ptr.vmem [resolvable:$true] %s287_s28  ;;  %s290_s4 = int_to_ptr.hbm [resolvable:$true] %s289_s4 }
   0x7   :  { %v334_v14 = vld [vmem:[%s557_s0] sm:$0xff]  ;;  %v49_v16 = vsel %vm45_vm0, %v488_v15, -inf  ;;  %349 = vset.pattern.permute.xlu1 %v407_v19  ;;  %351 = vset.pattern.permute.xlu0 %v407_v19  ;;  %v29_v58 = vld [vmem:[%s562_s5 + $0x8] sm:$0xff] }
   0x8   :  { %50 = vmax.xlane.f32.xlu2 %v49_v16  ;;  %v24_v20 = vld [vmem:[%s560_s3] sm:$0xff]  ;;  %vm278_vm4 = vcmp.eq.s32.totalorder %v536_v61, 0 }
   0x9   :  { %v46_v22 = vsel %vm45_vm0, %v24_v20, -inf  ;;  %v352_v25 = vld [vmem:[%s559_s2] ss:$0 sm:$0xff] }
   0xa   :  { %181 = vmatpush.bf16.msra.mxu0 %v340_v6  ;;  %v28_v32 = vld [vmem:[%s562_s5] sm:$0xff] }
   0xe   :  { %182 = vmatpush.bf16.msra.mxu0 %v339_v9 }
  0x10   :  { %47 = vmax.xlane.f32.xlu2 %v46_v22 }
  0x12   :  { %183 = vmatpush.bf16.msra.mxu0 %v338_v10 }
  0x16   :  { %184 = vmatpush.bf16.msra.mxu0 %v337_v11 }
  0x1a   :  { %185 = vmatpush.bf16.msra.mxu0 %v336_v12 }
  0x1e   :  { %186 = vmatpush.bf16.msra.mxu0 %v335_v13 }
  0x21   :  { %187 = vmatmul.bf16.vlgmr.msra.gmra.mxu0 %v334_v14 }
  0x78   :  { %v492_v17 = vpop.xlane.xlu1 %196 }
  0x79   :  { %v213_v18 = vsub.f32 %v456_v4, %v492_v17  ;;  %v200_v33 = vpop.xlane.xlu0 %199 }
  0x7a   :  { %v214_v34 = vsub.f32 %v458_v5, %v200_v33 }
  0x7b   :  { %v215_v21 = vmul.f32 1.442695, %v213_v18  ;;  %v517_v38 = vpop.xlane.xlu2 %50 }
  0x7c   :  { %v217_v35 = vmul.f32 1.442695, %v214_v34  ;;  %v53_v41 = vsub.f32 %v488_v15, %v517_v38 }
  0x7d   :  { %353 = vpow2.f32 %v215_v21 }
  0x7e   :  { %355 = vpow2.f32 %v217_v35  ;;  %v56_v43 = vmul.f32 1.442695, %v53_v41 }
  0x83   :  { %v354_v23 = vpop.eup %353  ;;  %v525_v44 = vpop.xlane.xlu2 %47 }
  0x84   :  { %v219_v24 = vsel %vm45_vm0, %v354_v23, 0.0  ;;  %v356_v36 = vpop.eup %355  ;;  %v52_v47 = vsub.f32 %v24_v20, %v525_v44 }
  0x85   :  { %220 = vadd.xlane.f32.xlu2 %v219_v24  ;;  %v222_v37 = vsel %vm45_vm0, %v356_v36, 0.0 }
  0x86   :  { %v54_v51 = vmul.f32 1.442695, %v52_v47 }
  0x9d   :  { %71 = vperm.xlu2 %350, %v28_v32  }
  0x9e   :  { %v188_v26 = vpop.f32.mrf.mxu0 }
  0x9f   :  { %v504_v27 = vadd.f32 %v352_v25, %v188_v26 }
  0xa1   :  { %v201_v28 = vsel %vm45_vm0, %v504_v27, -inf }
  0xa2   :  { %202 = vmax.xlane.f32.xlu1 %v201_v28 }
  0xa6   :  { %v190_v29 = vpop.f32.mrf.mxu0 }
  0xa7   :  { %v508_v30 = vadd.f32 %v352_v25, %v190_v29 }
  0xa9   :  { %v204_v31 = vsel %vm45_vm0, %v508_v30, -inf  ;;  %v232_v9 = vsub.f32 %v508_v30, %v458_v5  ;;  %v231_v5 = vsub.f32 %v504_v27, %v456_v4 }
  0xaa   :  { %205 = vmax.xlane.f32.xlu0 %v204_v31 }
  0xb2   :  { %223 = vadd.xlane.f32.xlu0 %v222_v37 }
  0xf8   :  { %v221_v59 = vpop.xlane.xlu2 %220 }
 0x100   :  { %v72_v62 = vpop.permute.xlu2 %71 }
 0x101   :  { %vm76_vm1 = vcmp.eq.s32.totalorder %v536_v61, %v72_v62 }
 0x102   :  { %v78_v63 = vsel %vm76_vm1, %v24_v20, 0.0 }
 0x103   :  { %v80_v0 = vsel %vm45_vm0, %v78_v63, 0.0 }
 0x115   :  { %v519_v39 = vpop.xlane.xlu1 %202 }
 0x116   :  { %v207_v40 = vsub.f32 %v504_v27, %v519_v39  ;;  %v233_v23 = vsub.f32 %v519_v39, %v492_v17 }
 0x118   :  { %v209_v42 = vmul.f32 1.442695, %v207_v40  ;;  %v235_v26 = vsub.f32 %v231_v5, %v233_v23 }
 0x11a   :  { %357 = vpow2.f32 %v209_v42 }
 0x11b   :  { %359 = vpow2.f32 %v56_v43 }
 0x11d   :  { %v206_v45 = vpop.xlane.xlu0 %205 }
 0x11e   :  { %v208_v46 = vsub.f32 %v508_v30, %v206_v45  ;;  %v234_v6 = vsub.f32 %v206_v45, %v200_v33 }
 0x120   :  { %v358_v48 = vpop.eup %357  ;;  %v211_v49 = vmul.f32 1.442695, %v208_v46  ;;  %v236_v12 = vsub.f32 %v232_v9, %v234_v6 }
 0x121   :  { %v225_v50 = vsel %vm45_vm0, %v358_v48, 0.0  ;;  %v360_v52 = vpop.eup %359 }
 0x122   :  { %361 = vpow2.f32 %v211_v49  ;;  %226 = vadd.xlane.f32.xlu0 %v225_v50  ;;  %v61_v53 = vsel %vm45_vm0, %v360_v52, 0.0 }
 0x123   :  { %363 = vpow2.f32 %v54_v51 }
 0x125   :  { %v224_v1 = vpop.xlane.xlu0 %223 }
 0x126   :  { %365 = vlog2.f32 %v224_v1 }
 0x128   :  { %v362_v54 = vpop.eup %361 }
 0x129   :  { %v228_v55 = vsel %vm45_vm0, %v362_v54, 0.0  ;;  %v364_v56 = vpop.eup %363 }
 0x12a   :  { %229 = vadd.xlane.f32.xlu1 %v228_v55  ;;  %62 = vadd.xlane.f32.xlu0 %v61_v53  ;;  %v58_v57 = vsel %vm45_vm0, %v364_v56, 0.0 }
 0x12c   :  { %v366_v3 = vpop.eup %365 }
 0x12d   :  { %v244_v10 = vmul.f32 0.6931472, %v366_v3 }
 0x132   :  { %59 = vadd.xlane.f32.xlu0 %v58_v57 }
 0x143   :  { %74 = vperm.xlu1 %349, %v29_v58  }
 0x16d   :  { %81 = vadd.xlane.f32.xlu1 %v80_v0 }
 0x195   :  { %v227_v8 = vpop.xlane.xlu0 %226 }
 0x19d   :  { %v230_v2 = vpop.xlane.xlu1 %229  ;;  %v63_v33 = vpop.xlane.xlu0 %62 }
 0x19e   :  { %367 = vlog2.f32 %v230_v2 }
 0x19f   :  { %369 = vlog2.f32 %v221_v59 }
 0x1a0   :  { %371 = vlog2.f32 %v227_v8 }
 0x1a1   :  { %373 = vlog2.f32 %v63_v33 }
 0x1a4   :  { %v368_v7 = vpop.eup %367 }
 0x1a5   :  { %v240_v11 = vmul.f32 0.6931472, %v368_v7  ;;  %v370_v18 = vpop.eup %369  ;;  %v60_v17 = vpop.xlane.xlu0 %59 }
 0x1a6   :  { %v372_v19 = vpop.eup %371  ;;  %v242_v21 = vmul.f32 0.6931472, %v370_v18  ;;  %375 = vlog2.f32 %v60_v17 }
 0x1a7   :  { %v246_v13 = vsub.f32 %v240_v11, %v244_v10  ;;  %v238_v22 = vmul.f32 0.6931472, %v372_v19  ;;  %v374_v4 = vpop.eup %373  ;;  %377 = vrcp.f32 %v230_v2 }
 0x1a8   :  { %v67_v34 = vmul.f32 0.6931472, %v374_v4  ;;  %379 = vrcp.f32 %v227_v8 }
 0x1a9   :  { %v248_v14 = vsub.f32 %v236_v12, %v246_v13  ;;  %v245_v24 = vsub.f32 %v238_v22, %v242_v21 }
 0x1aa   :  { %v69_v37 = vadd.f32 %v67_v34, %v517_v38 }
 0x1ab   :  { %v250_v16 = vmul.f32 %v362_v54, %v248_v14  ;;  %v247_v30 = vsub.f32 %v235_v26, %v245_v24 }
 0x1ac   :  { %v376_v27 = vpop.eup %375 }
 0x1ad   :  { %v254_v20 = vsel %vm45_vm0, %v250_v16, 0.0  ;;  %v249_v31 = vmul.f32 %v358_v48, %v247_v30  ;;  %v65_v35 = vmul.f32 0.6931472, %v376_v27  ;;  %v378_v43 = vpop.eup %377 }
 0x1ae   :  { %255 = vadd.xlane.f32.xlu2 %v254_v20  ;;  %v380_v51 = vpop.eup %379 }
 0x1af   :  { %v251_v32 = vsel %vm45_vm0, %v249_v31, 0.0 }
 0x1b5   :  { %v75_v25 = vpop.permute.xlu1 %74 }
 0x1b6   :  { %vm77_vm2 = vcmp.eq.s32.totalorder %v536_v61, %v75_v25 }
 0x1b7   :  { %v79_v28 = vsel %vm77_vm2, %v488_v15, 0.0  ;;  %v68_v15 = vadd.f32 %v65_v35, %v525_v44 }
 0x1b8   :  { %v83_v29 = vsel %vm45_vm0, %v79_v28, 0.0 }
 0x1b9   :  { %84 = vadd.xlane.f32.xlu0 %v83_v29 }
 0x1c1   :  { %252 = vadd.xlane.f32.xlu0 %v251_v32 }
 0x1e0   :  { %v82_v36 = vpop.xlane.xlu1 %81 }
 0x1e1   :  { %v86_v41 = vsub.f32 %v68_v15, %v82_v36 }
 0x1e3   :  { %v91_v47 = vsel %vm90_vm3, %v86_v41, 0.0 }
 0x221   :  { %v256_v39 = vpop.xlane.xlu2 %255 }
 0x222   :  { %v260_v45 = vmul.f32 %v378_v43, %v256_v39 }
 0x224   :  { %v262_v50 = vmul.f32 0.0, %v260_v45 }
 0x226   :  { %v264_v54 = vsel %vm90_vm3, %v262_v50, 0.0 }
 0x22c   :  { %v85_v40 = vpop.xlane.xlu0 %84 }
 0x22d   :  { %v87_v42 = vsub.f32 %v69_v37, %v85_v40 }
 0x22f   :  { %v89_v46 = vmul.f32 0.0, %v87_v42 }
 0x231   :  { %v92_v48 = vsel %vm90_vm3, %v89_v46, 0.0 }
 0x232   :  { %v93_v49 = vadd.f32 %v92_v48, %v91_v47 }
 0x234   :  { %v253_v52 = vpop.xlane.xlu0 %252  ;;  %94 = vadd.xlane.f32.xlu0 %v93_v49 }
 0x235   :  { %v259_v53 = vmul.f32 %v380_v51, %v253_v52 }
 0x237   :  { %v263_v44 = vsel %vm90_vm3, %v259_v53, 0.0 }
 0x238   :  { %v265_v38 = vadd.f32 %v264_v54, %v263_v44 }
 0x23c   :  { %266 = vadd.xlane.f32.xlu0 %v265_v38 }
 0x2a7   :  { %v95_v55 = vpop.xlane.xlu0 %94 }
 0x2a8   :  { %v96_v56 = vrot.slane %v95_v55, 4 }
 0x2aa   :  { %v97_v57 = vadd.f32 %v96_v56, %v95_v55 }
 0x2ac   :  { %v98_v58 = vrot.slane %v97_v57, 2 }
 0x2ae   :  { %v99_v59 = vadd.f32 %v98_v58, %v97_v57 }
 0x2af   :  { %v267_v60 = vpop.xlane.xlu0 %266 }
 0x2b0   :  { %v268_v62 = vrot.slane %v267_v60, 4  ;;  %v100_v63 = vrot.slane %v99_v59, 1 }
 0x2b2   :  { %v269_v0 = vadd.f32 %v268_v62, %v267_v60  ;;  %v101_v1 = vadd.f32 %v100_v63, %v99_v59 }
 0x2b4   :  { %v270_v2 = vrot.slane %v269_v0, 2  ;;  %343 = vpush %v101_v1 }
 0x2b6   :  { %v271_v3 = vadd.f32 %v270_v2, %v269_v0 }
 0x2b8   :  { %v272_v6 = vrot.slane %v271_v3, 1 }
 0x2ba   :  { %v273_v7 = vadd.f32 %v272_v6, %v271_v3 }
 0x2bc   :  { %345 = vpush %v273_v7 }
 0x2e5   :  { %s344_s5 = spop %343 }
 0x2e6   :  { %s275_s24 = smul.f32 0.0625, %s344_s5 }
 0x2ed   :  { %s346_s25 = spop %345 }
 0x2ee   :  { %s276_s26 = smul.f32 0.015625, %s346_s25 }
 0x2f0   :  { %s277_s7 = sadd.f32 %s276_s26, %s275_s24 }
 0x2f2   :  { %v279_v8 = vstv %s277_s7 }
 0x2f3   :  { %v280_v9 = vsel %vm278_vm4, %v279_v8, 0.0 }
 0x2f4   :  { %281 = vst [vmem:[#allocation2] sm:$0x1] %v280_v9 }
 0x2f5   :  { %292 = dma.vmem_to_hbm [thread:$0]  %s288_s28, 16, %s290_s4, [#allocation3]  }
 0x2f6   :  { %405 = dma.done.wait [#allocation3], 16  }
 0x2f7   :  { %406 = vsyncadd [#allocation3], 4294967280 }
 0x2f8   :  { %297 = vsyncpa [#allocation3], 1 }

</bundles_post_ra>
